<compile_context>
chip_gen: v7x
topology: tpu7x:2x2x1
jax: 0.10.0
libtpu: 0.0.40
codegen_flags: <defaults>
</compile_context>

<pallas_src>
import functools

import jax
import jax.numpy as jnp
from jax.experimental import pallas as pl
from jax.experimental.pallas import tpu as pltpu


def _classifier_kernel(kernel_sizes, tok_ref, tab_ref, w_ref, tail_ref, out_ref):
    """Fused forward pass for one batch tile.

    tok_ref  : (TB, S)            int32   token ids
    tab_ref  : (V, D)             cdtype  embedding table
    w_ref    : (k_max*D, K*C)     cdtype  fused conv weight slab
    tail_ref : (3, K*C)           f32     row0=conv bias, row1=linear weight,
                                          row2=[linear bias, 0, ...]
    out_ref  : (TB, 1)            f32     sigmoid probabilities
    """
    TB, S = tok_ref.shape
    V, D = tab_ref.shape
    KC = w_ref.shape[1]
    K = len(kernel_sizes)
    C = KC // K
    k_max = max(kernel_sizes)
    cdtype = tab_ref.dtype

    # ---- Embedding gather as a one-hot matmul (runs on the MXU). ----
    tok = tok_ref[...]                                               # (TB, S) i32
    v_iota = jax.lax.broadcasted_iota(jnp.int32, (TB, S, V), 2)
    onehot = (tok[:, :, None] == v_iota).astype(cdtype)              # (TB, S, V)
    emb = jnp.dot(onehot.reshape(TB * S, V), tab_ref[...],
                  preferred_element_type=jnp.float32)                # (TB*S, D) f32
    emb = emb.astype(cdtype).reshape(TB, S, D)

    # ---- im2col over time, zero-padded to the k_max window. ----
    if k_max > 1:
        zpad = jnp.zeros((TB, k_max - 1, D), cdtype)
        emb_pad = jnp.concatenate([emb, zpad], axis=1)               # (TB, S+k_max-1, D)
        patches = jnp.concatenate(
            [emb_pad[:, dk:dk + S, :] for dk in range(k_max)], axis=-1)
    else:
        patches = emb                                                # (TB, S, k_max*D)

    # ---- All conv branches in ONE matmul. ----
    scores = jnp.dot(patches.reshape(TB * S, k_max * D), w_ref[...],
                     preferred_element_type=jnp.float32)             # (TB*S, KC) f32
    scores = scores.reshape(TB, S, KC) + tail_ref[0:1, :][None, :, :]
    act = jnp.maximum(scores, 0.0)                                   # ReLU

    # ---- Mask window positions past each branch's valid range, then max-pool.
    # Post-ReLU values are >= 0, so zeroing invalid positions preserves the max
    # over the valid range (there is always >= 1 valid position since S >= k).
    s_iota = jax.lax.broadcasted_iota(jnp.int32, (S, KC), 0)
    c_iota = jax.lax.broadcasted_iota(jnp.int32, (S, KC), 1)
    limit = jnp.full((S, KC), S, jnp.int32)
    for i, k in enumerate(kernel_sizes):
        in_branch = (c_iota >= i * C) & (c_iota < (i + 1) * C)
        limit = jnp.where(in_branch, S - k + 1, limit)
    act = jnp.where((s_iota < limit)[None, :, :], act, 0.0)
    pooled = jnp.max(act, axis=1)                                    # (TB, KC)

    # TODO(synk): dropout is identity at inference time; not implemented.

    # ---- Final Linear (KC -> 1) + sigmoid. ----
    logit = jnp.sum(pooled * tail_ref[1:2, :], axis=1, keepdims=True)  # (TB, 1)
    logit = logit + tail_ref[2:3, 0:1]                               # + out bias
    out_ref[...] = jax.nn.sigmoid(logit).astype(out_ref.dtype)


def _pick_batch_tile(batch):
    if batch <= 128:
        return batch
    for tb in (128, 64, 32, 16, 8):
        if batch % tb == 0:
            return tb
    return batch


def binary_classifier_cnn(tokens, params, kernel_sizes, compute_dtype=jnp.bfloat16):
    """tokens: int32 (batch, seq).  Returns probabilities of shape (batch,)."""
    kernel_sizes = tuple(int(k) for k in kernel_sizes)
    B, S = tokens.shape
    k_max = max(kernel_sizes)
    # Mirrors BinaryClassifierCNN.check_input's min-length requirement.
    # TODO(synk): PyTorch pads short sequences with PAD tokens; here we require S >= max(k).
    assert S >= k_max, f"seq_len={S} must be >= max(kernel_sizes)={k_max}"

    embed = params["embed"]
    V, D = embed.shape
    C = params["conv_w"][0].shape[-1]
    K = len(kernel_sizes)
    KC = K * C

    # ---- Pack parameters into two slabs (done once per call; cheap XLA ops). ----
    w_cols = []
    for k, w in zip(kernel_sizes, params["conv_w"]):                 # w: (k, D, C)
        wf = w.reshape(k * D, C)
        wf = jnp.pad(wf, ((0, (k_max - k) * D), (0, 0)))
        w_cols.append(wf)
    w_slab = jnp.concatenate(w_cols, axis=1).astype(compute_dtype)   # (k_max*D, KC)

    conv_bias = jnp.concatenate(
        [b.reshape(-1) for b in params["conv_b"]]).astype(jnp.float32)        # (KC,)
    out_w_row = params["out_w"].reshape(-1).astype(jnp.float32)               # (KC,)
    out_b_row = jnp.zeros((KC,), jnp.float32).at[0].set(
        params["out_b"].reshape(()).astype(jnp.float32))                      # (KC,)
    tail = jnp.stack([conv_bias, out_w_row, out_b_row], axis=0)               # (3, KC)

    table = embed.astype(compute_dtype)                                       # (V, D)
    tokens = tokens.astype(jnp.int32)

    # ---- Batch grid (parallel -> both v7x TensorCores once B is non-trivial). ----
    TB = _pick_batch_tile(B)
    assert B % TB == 0
    grid = (B // TB,)

    out = pl.pallas_call(
        functools.partial(_classifier_kernel, kernel_sizes),
        out_shape=jax.ShapeDtypeStruct((B, 1), jnp.float32),
        grid_spec=pltpu.PrefetchScalarGridSpec(
            num_scalar_prefetch=0,
            grid=grid,
            in_specs=[
                pl.BlockSpec((TB, S), lambda b: (b, 0)),             # tokens
                pl.BlockSpec((V, D), lambda b: (0, 0)),              # embed table
                pl.BlockSpec((k_max * D, KC), lambda b: (0, 0)),     # conv weight slab
                pl.BlockSpec((3, KC), lambda b: (0, 0)),             # bias/linear slab
            ],
            out_specs=pl.BlockSpec((TB, 1), lambda b: (b, 0)),
        ),
        compiler_params=pltpu.CompilerParams(
            dimension_semantics=("parallel",)),
    )(tokens, table, w_slab, tail)
    return out[:, 0]                                                 # matches torch squeeze_(1)


def _reference(tokens, params, kernel_sizes):
    """Pure-JAX f32 reference of the PyTorch forward pass (for correctness check)."""
    emb = jnp.take(params["embed"], tokens, axis=0).astype(jnp.float32)       # (B, S, D)
    B, S, _ = emb.shape
    feats = []
    for w, b, k in zip(params["conv_w"], params["conv_b"], kernel_sizes):
        s_out = S - k + 1
        acc = jnp.zeros((B, s_out, w.shape[-1]), jnp.float32)
        for dk in range(k):
            acc = acc + jnp.einsum("bsd,dc->bsc", emb[:, dk:dk + s_out, :], w[dk])
        acc = acc + b[0][None, None, :]
        feats.append(jnp.max(jnp.maximum(acc, 0.0), axis=1))
    pooled = jnp.concatenate(feats, axis=-1)
    logit = pooled @ params["out_w"] + params["out_b"][0, 0]
    return jax.nn.sigmoid(logit[:, 0])


if __name__ == "__main__":
    # Module hyper-params (small, consistent with the PyTorch __init__).
    num_vocab, embed_dim, num_kernel = 32, 16, 8
    kernel_sizes = (2, 3, 4)
    dropout_p = 0.5  # unused at inference
    batch, seq = 2, 8

    key = jax.random.PRNGKey(0)
    n_k = len(kernel_sizes)
    keys = jax.random.split(key, 3 + 2 * n_k)
    params = {
        "embed": jax.random.normal(keys[0], (num_vocab, embed_dim), jnp.float32) * 0.1,
        "conv_w": [
            jax.random.normal(keys[1 + i], (k, embed_dim, num_kernel), jnp.float32) * 0.1
            for i, k in enumerate(kernel_sizes)
        ],
        "conv_b": [
            jax.random.normal(keys[1 + n_k + i], (1, num_kernel), jnp.float32) * 0.1
            for i in range(n_k)
        ],
        "out_w": jax.random.normal(keys[-2], (n_k * num_kernel, 1), jnp.float32) * 0.1,
        "out_b": jax.random.normal(keys[-1], (1, 1), jnp.float32) * 0.1,
    }

    tokens = jax.random.randint(jax.random.PRNGKey(1), (batch, seq), 0, num_vocab,
                                dtype=jnp.int32)

    out = binary_classifier_cnn(tokens, params, kernel_sizes)
    out = jax.block_until_ready(out)
    assert out.shape == (batch,)
    assert bool(jnp.all((out >= 0.0) & (out <= 1.0)))

    ref = jax.block_until_ready(_reference(tokens, params, kernel_sizes))
    assert bool(jnp.max(jnp.abs(out - ref)) < 1e-2), (out, ref)

    print("KERNEL_OK")
</pallas_src>

<mosaic_0001>
module attributes {stable_mosaic.version = 11 : i64} {
  func.func @_classifier_kernel(%arg0: i32, %arg1: memref<2x8xi32, #tpu.memory_space<vmem>>, %arg2: memref<32x16xbf16, #tpu.memory_space<vmem>>, %arg3: memref<64x24xbf16, #tpu.memory_space<vmem>>, %arg4: memref<3x24xf32, #tpu.memory_space<vmem>>, %arg5: memref<2x1xf32, #tpu.memory_space<vmem>>) attributes {dimension_semantics = [#tpu.dimension_semantics<parallel>], iteration_bounds = array<i64: 1>, scalar_prefetch = 0 : i64, scratch_operands = 0 : i64, tpu.core_type = #tpu.core_type<tc>, window_params = [{transform_indices = @transform_0, window_bounds = array<i64: 2, 8>}, {pipeline_mode = #tpu.pipeline_mode<synchronous>, transform_indices = @transform_1, window_bounds = array<i64: 32, 16>}, {pipeline_mode = #tpu.pipeline_mode<synchronous>, transform_indices = @transform_2, window_bounds = array<i64: 64, 24>}, {pipeline_mode = #tpu.pipeline_mode<synchronous>, transform_indices = @transform_3, window_bounds = array<i64: 3, 24>}, {transform_indices = @transform_4, window_bounds = array<i64: 2, 1>}]} {
    %c0 = arith.constant 0 : index
    %c0_0 = arith.constant 0 : index
    %0 = vector.load %arg1[%c0, %c0_0] : memref<2x8xi32, #tpu.memory_space<vmem>>, vector<2x8xi32>
    %1 = tpu.iota {dimensions = array<i32: 2>} : vector<2x8x32xi32>
    %2 = vector.shape_cast %0 : vector<2x8xi32> to vector<2x8x1xi32>
    %3 = vector.broadcast %2 : vector<2x8x1xi32> to vector<2x8x32xi32>
    %4 = arith.cmpi eq, %3, %1 : vector<2x8x32xi32>
    %5 = arith.extui %4 : vector<2x8x32xi1> to vector<2x8x32xi32>
    %6 = arith.sitofp %5 : vector<2x8x32xi32> to vector<2x8x32xf32>
    %7 = arith.truncf %6 : vector<2x8x32xf32> to vector<2x8x32xbf16>
    %8 = vector.shape_cast %7 : vector<2x8x32xbf16> to vector<16x32xbf16>
    %c0_1 = arith.constant 0 : index
    %c0_2 = arith.constant 0 : index
    %9 = vector.load %arg2[%c0_1, %c0_2] : memref<32x16xbf16, #tpu.memory_space<vmem>>, vector<32x16xbf16>
    %cst = arith.constant dense<0.000000e+00> : vector<16x16xf32>
    %10 = tpu.matmul %8, %9, %cst {dimension_numbers = #tpu.dot_dimension_numbers<[1], [0], [0], [1], [0, 0, 1, 1], [], []>} : vector<16x32xbf16>, vector<32x16xbf16>, vector<16x16xf32> -> vector<16x16xf32>
    %11 = arith.truncf %10 : vector<16x16xf32> to vector<16x16xbf16>
    %12 = vector.shape_cast %11 : vector<16x16xbf16> to vector<2x8x16xbf16>
    %cst_3 = arith.constant 0.000000e+00 : bf16
    %13 = vector.broadcast %cst_3 : bf16 to vector<2x3x16xbf16>
    %14 = tpu.concatenate %12, %13 in 1 : vector<2x8x16xbf16>, vector<2x3x16xbf16> -> vector<2x11x16xbf16>
    %15 = vector.extract_strided_slice %14 {offsets = [0, 0, 0], sizes = [2, 8, 16], strides = [1, 1, 1]} : vector<2x11x16xbf16> to vector<2x8x16xbf16>
    %16 = vector.extract_strided_slice %14 {offsets = [0, 1, 0], sizes = [2, 8, 16], strides = [1, 1, 1]} : vector<2x11x16xbf16> to vector<2x8x16xbf16>
    %17 = vector.extract_strided_slice %14 {offsets = [0, 2, 0], sizes = [2, 8, 16], strides = [1, 1, 1]} : vector<2x11x16xbf16> to vector<2x8x16xbf16>
    %18 = vector.extract_strided_slice %14 {offsets = [0, 3, 0], sizes = [2, 8, 16], strides = [1, 1, 1]} : vector<2x11x16xbf16> to vector<2x8x16xbf16>
    %19 = tpu.concatenate %15, %16, %17, %18 in 2 : vector<2x8x16xbf16>, vector<2x8x16xbf16>, vector<2x8x16xbf16>, vector<2x8x16xbf16> -> vector<2x8x64xbf16>
    %20 = vector.shape_cast %19 : vector<2x8x64xbf16> to vector<16x64xbf16>
    %c0_4 = arith.constant 0 : index
    %c0_5 = arith.constant 0 : index
    %21 = vector.load %arg3[%c0_4, %c0_5] : memref<64x24xbf16, #tpu.memory_space<vmem>>, vector<64x24xbf16>
    %cst_6 = arith.constant dense<0.000000e+00> : vector<16x24xf32>
    %22 = tpu.matmul %20, %21, %cst_6 {dimension_numbers = #tpu.dot_dimension_numbers<[1], [0], [0], [1], [0, 0, 1, 1], [], []>} : vector<16x64xbf16>, vector<64x24xbf16>, vector<16x24xf32> -> vector<16x24xf32>
    %23 = vector.shape_cast %22 : vector<16x24xf32> to vector<2x8x24xf32>
    %c0_7 = arith.constant 0 : index
    %c0_8 = arith.constant 0 : index
    %24 = vector.load %arg4[%c0_7, %c0_8] : memref<3x24xf32, #tpu.memory_space<vmem>>, vector<1x24xf32>
    %25 = vector.shape_cast %24 : vector<1x24xf32> to vector<1x1x24xf32>
    %26 = vector.broadcast %25 : vector<1x1x24xf32> to vector<2x8x24xf32>
    %27 = arith.addf %23, %26 : vector<2x8x24xf32>
    %cst_9 = arith.constant 0.000000e+00 : f32
    %28 = vector.broadcast %cst_9 : f32 to vector<2x8x24xf32>
    %29 = arith.maximumf %27, %28 : vector<2x8x24xf32>
    %30 = tpu.iota {dimensions = array<i32: 0>} : vector<8x24xi32>
    %31 = tpu.iota {dimensions = array<i32: 1>} : vector<8x24xi32>
    %c8_i32 = arith.constant 8 : i32
    %32 = vector.broadcast %c8_i32 : i32 to vector<8x24xi32>
    %c0_i32 = arith.constant 0 : i32
    %33 = vector.broadcast %c0_i32 : i32 to vector<8x24xi32>
    %34 = arith.cmpi sge, %31, %33 : vector<8x24xi32>
    %c8_i32_10 = arith.constant 8 : i32
    %35 = vector.broadcast %c8_i32_10 : i32 to vector<8x24xi32>
    %36 = arith.cmpi slt, %31, %35 : vector<8x24xi32>
    %37 = arith.andi %34, %36 : vector<8x24xi1>
    %c7_i32 = arith.constant 7 : i32
    %38 = vector.broadcast %c7_i32 : i32 to vector<8x24xi32>
    %39 = arith.select %37, %38, %32 : vector<8x24xi1>, vector<8x24xi32>
    %c8_i32_11 = arith.constant 8 : i32
    %40 = vector.broadcast %c8_i32_11 : i32 to vector<8x24xi32>
    %41 = arith.cmpi sge, %31, %40 : vector<8x24xi32>
    %c16_i32 = arith.constant 16 : i32
    %42 = vector.broadcast %c16_i32 : i32 to vector<8x24xi32>
    %43 = arith.cmpi slt, %31, %42 : vector<8x24xi32>
    %44 = arith.andi %41, %43 : vector<8x24xi1>
    %c6_i32 = arith.constant 6 : i32
    %45 = vector.broadcast %c6_i32 : i32 to vector<8x24xi32>
    %46 = arith.select %44, %45, %39 : vector<8x24xi1>, vector<8x24xi32>
    %c16_i32_12 = arith.constant 16 : i32
    %47 = vector.broadcast %c16_i32_12 : i32 to vector<8x24xi32>
    %48 = arith.cmpi sge, %31, %47 : vector<8x24xi32>
    %c24_i32 = arith.constant 24 : i32
    %49 = vector.broadcast %c24_i32 : i32 to vector<8x24xi32>
    %50 = arith.cmpi slt, %31, %49 : vector<8x24xi32>
    %51 = arith.andi %48, %50 : vector<8x24xi1>
    %c5_i32 = arith.constant 5 : i32
    %52 = vector.broadcast %c5_i32 : i32 to vector<8x24xi32>
    %53 = arith.select %51, %52, %46 : vector<8x24xi1>, vector<8x24xi32>
    %54 = arith.cmpi slt, %30, %53 : vector<8x24xi32>
    %55 = vector.shape_cast %54 : vector<8x24xi1> to vector<1x8x24xi1>
    %cst_13 = arith.constant 0.000000e+00 : f32
    %56 = vector.shape_cast %55 : vector<1x8x24xi1> to vector<1x8x24xi1>
    %57 = vector.broadcast %56 : vector<1x8x24xi1> to vector<2x8x24xi1>
    %58 = vector.broadcast %cst_13 : f32 to vector<2x8x24xf32>
    %59 = arith.select %57, %29, %58 : vector<2x8x24xi1>, vector<2x8x24xf32>
    %cst_14 = arith.constant dense<0xFF800000> : vector<2x24xf32>
    %60 = vector.multi_reduction <maximumf>, %59, %cst_14 [1] : vector<2x8x24xf32> to vector<2x24xf32>
    %c1 = arith.constant 1 : index
    %c0_15 = arith.constant 0 : index
    %61 = vector.load %arg4[%c1, %c0_15] : memref<3x24xf32, #tpu.memory_space<vmem>>, vector<1x24xf32>
    %62 = vector.broadcast %61 : vector<1x24xf32> to vector<2x24xf32>
    %63 = arith.mulf %60, %62 : vector<2x24xf32>
    %cst_16 = arith.constant dense<0.000000e+00> : vector<2xf32>
    %64 = vector.multi_reduction <add>, %63, %cst_16 [1] : vector<2x24xf32> to vector<2xf32>
    %65 = vector.shape_cast %64 : vector<2xf32> to vector<2x1xf32>
    %c2 = arith.constant 2 : index
    %c0_17 = arith.constant 0 : index
    %66 = vector.load %arg4[%c2, %c0_17] : memref<3x24xf32, #tpu.memory_space<vmem>>, vector<1x1xf32>
    %67 = vector.broadcast %66 : vector<1x1xf32> to vector<2x1xf32>
    %68 = arith.addf %65, %67 : vector<2x1xf32>
    %69 = arith.negf %68 : vector<2x1xf32>
    %70 = math.exp %69 : vector<2x1xf32>
    %cst_18 = arith.constant 1.000000e+00 : f32
    %71 = vector.broadcast %cst_18 : f32 to vector<2x1xf32>
    %72 = arith.addf %71, %70 : vector<2x1xf32>
    %73 = arith.divf %71, %72 : vector<2x1xf32>
    %c0_19 = arith.constant 0 : index
    %c0_20 = arith.constant 0 : index
    %74 = vector.load %arg5[%c0_19, %c0_20] : memref<2x1xf32, #tpu.memory_space<vmem>>, vector<2x1xf32>
    tpu.vector_store %arg5[%c0_19, %c0_20], %73 {strides = array<i32>} : memref<2x1xf32, #tpu.memory_space<vmem>>, vector<2x1xf32>,
    return
  }
  func.func @transform_0(%arg0: i32) -> (i32, i32) {
    %c0_i32 = arith.constant 0 : i32
    %c0_i32_0 = arith.constant 0 : i32
    return %arg0, %c0_i32 : i32, i32
  }
  func.func @transform_1(%arg0: i32) -> (i32, i32) {
    %c0_i32 = arith.constant 0 : i32
    %c0_i32_0 = arith.constant 0 : i32
    %c0_i32_1 = arith.constant 0 : i32
    return %c0_i32, %c0_i32_0 : i32, i32
  }
  func.func @transform_2(%arg0: i32) -> (i32, i32) {
    %c0_i32 = arith.constant 0 : i32
    %c0_i32_0 = arith.constant 0 : i32
    %c0_i32_1 = arith.constant 0 : i32
    return %c0_i32, %c0_i32_0 : i32, i32
  }
  func.func @transform_3(%arg0: i32) -> (i32, i32) {
    %c0_i32 = arith.constant 0 : i32
    %c0_i32_0 = arith.constant 0 : i32
    %c0_i32_1 = arith.constant 0 : i32
    return %c0_i32, %c0_i32_0 : i32, i32
  }
  func.func @transform_4(%arg0: i32) -> (i32, i32) {
    %c0_i32 = arith.constant 0 : i32
    %c0_i32_0 = arith.constant 0 : i32
    return %arg0, %c0_i32 : i32, i32
  }
}

</mosaic_0001>

<bundles_post_ra>
// kernel: tpu_custom_call.1
= control target key start
LH: loop header
LB: loop body
LE: loop exit
PB: predicated region body
PF: predicated region fallthrough
CT: control target
= control target key end

     0   :  { %v19_v0 = vlaneseq  ;;  %v394_v1 = vmov 0.0   ;;  %vm395_vm0 = vmmov 0   ;;  %vm64_vm3 = vcmask 261120   ;;  %s396_s25 = smov 32   ;;  %s397_s28 = smov 48   ;;  %s475_s0 = inlined_call_operand.vmem [shape: s32[2,8], index: 0, kind: input, shape index: {}]   ;;  %s476_s1 = inlined_call_operand.vmem [shape: bf16[32,16], index: 1, kind: input, shape index: {}]   ;;  %s477_s2 = inlined_call_operand.vmem [shape: bf16[64,24], index: 2, kind: input, shape index: {}]   ;;  %s478_s3 = inlined_call_operand.vmem [shape: f32[3,24], index: 3, kind: input, shape index: {}]   ;;  %s479_s4 = inlined_call_operand.vmem [shape: f32[2,1], index: 4, kind: output, shape index: {}]  }
   0x1   :  { %358 = vmatprep.subr.bf16.mxu0 %v394_v1  ;;  %366 = vmatprep.subr.bf16.mxu1 %v394_v1  ;;  %v384_v3 = vld [vmem:[%s476_s1] sm:$0xff]   ;;  %v385_v7 = vld [vmem:[%s476_s1 + $0x8] sm:$0xff]   ;;  %vm115_vm4 = vcmask 1043456   ;;  %v388_v22 = vld [vmem:[%s477_s2 + $0x10] sm:$0xff]   ;;  %s398_s29 = smov 16   ;;  %vm155_vm5 = vcmask 130048  }
   0x2   :  { %v425_v2 = vshrl.u32 %v19_v0, 7  ;;  %v18_v4 = vld [vmem:[%s475_s0] sm:$0x3]  ;;  %359 = vmatpush3.bf16.msra.mxu0 %v384_v3  ;;  %362 = vmatprep.mubr.msk.bf16.mxu0 %vm395_vm0, %v394_v1  ;;  %v438_v10 = vand.u32 127, %v19_v0  ;;  %v387_v17 = vld [vmem:[%s477_s2 + $0x8] sm:$0xff]   ;;  %v389_v34 = vld [vmem:[%s477_s2 + $0x18] sm:$0xff]  }
   0x3   :  { %360 = vmatprep.subr.bf16.mxu0 %v394_v1  ;;  %374 = vmatprep.mubr.msk.bf16.mxu1 %vm395_vm0, %v394_v1  ;;  %v386_v16 = vld [vmem:[%s477_s2] sm:$0xff]   ;;  %vm164_vm6 = vcmask 392192   ;;  %vm206_vm7 = vcmask 523264   ;;  %v399_v57 = vmov 8   ;;  %vm279_vm0 = vcmask 195584  }
   0x4   :  { %v23_v5 = vsub.s32 0, %v425_v2  ;;  %v30_v6 = vsub.s32 1, %v425_v2  ;;  %367 = vmatpush3.bf16.msra.mxu1 %v386_v16  ;;  %vm263_vm8 = vcmp.lt.s32.totalorder %v438_v10, 8  ;;  %vm266_vm9 = vcmp.ge.s32.totalorder %v438_v10, 8  ;;  %v343_v60 = vld [vmem:[%s478_s3] ss:$0 sm:$0xff] }
   0x5   :  { %368 = vmatprep.subr.bf16.mxu1 %v394_v1  ;;  %vm267_vm10 = vcmp.lt.s32.totalorder %v438_v10, 16  ;;  %v265_v58 = vsel %vm263_vm8, 7, %v399_v57  ;;  %vm270_vm12 = vcmp.ge.s32.totalorder %v438_v10, 16  ;;  %vm271_vm13 = vcmp.lt.s32.totalorder %v438_v10, 24 }
   0x6   :  { %v24_v8 = vrot.slane %v18_v4, %v23_v5  ;;  %v31_v9 = vrot.slane %v18_v4, %v30_v6  ;;  %361 = vmatpush3.bf16.msra.mxu0 %v385_v7  ;;  %vm268_vm11 = vmand %vm266_vm9, %vm267_vm10 }
   0x7   :  { %v269_v59 = vsel %vm268_vm11, 6, %v265_v58  ;;  %vm272_vm14 = vmand %vm270_vm12, %vm271_vm13 }
   0x8   :  { %26 = vbcast.lane.b32.xlu0 %v24_v8, 256  ;;  %369 = vmatpush3.bf16.msra.mxu1 %v387_v17  ;;  %v273_v61 = vsel %vm272_vm14, 5, %v269_v59 }
   0x9   :  { %370 = vmatprep.subr.bf16.mxu1 %v394_v1  ;;  %vm274_vm15 = vcmp.lt.s32.totalorder %v425_v2, %v273_v61 }
   0xc   :  { %33 = vbcast.lane.b32.xlu0 %v31_v9, 256  ;;  %371 = vmatpush3.bf16.msra.mxu1 %v388_v22  ;;  %v344_v22 = vld [vmem:[%s478_s3 + $0x1] ss:$0 sm:$0xff] }
   0xd   :  { %372 = vmatprep.subr.bf16.mxu1 %v394_v1 }
  0x10   :  { %373 = vmatpush3.bf16.msra.mxu1 %v389_v34 }
  0x7a   :  { %v27_v11 = vpop.permute.xlu0 %26 }
  0x7b   :  { %vm35_vm1 = vcmp.eq.s32.totalorder %v27_v11, %v438_v10 }
  0x7c   :  { %v329_v13 = vsel %vm35_vm1, 1.0, %v394_v1  ;;  %vm304_vm1 = vcmask 1041409  }
  0x7e   :  { %v34_v12 = vpop.permute.xlu0 %33 }
  0x7f   :  { %vm36_vm2 = vcmp.eq.s32.totalorder %v34_v12, %v438_v10 }
  0x80   :  { %v330_v14 = vsel %vm36_vm2, 1.0, %v394_v1  ;;  %vm307_vm2 = vcmask 189440  }
  0x81   :  { %v347_v15 = vpack.c.bf16 %v330_v14, %v329_v13 }
  0x83   :  { %363 = vmatmul.mubr.msk.bf16.vlgmr.msra.gmra.mrb[0].mxu0 %vm64_vm3, %v347_v15 }
 0x156   :  { %v102_v18 = vpop.f32.mrb[0].mxu0 }
 0x157   :  { %v348_v19 = vpack.c.bf16 %v102_v18, %v102_v18  ;;  %v364_v20 = vpop.f32.mrb[1].mxu0 }
 0x158   :  { %v105_v21 = vpop.f32.mrb[2].mxu0 }
 0x159   :  { %v118_v23 = vsel %vm115_vm4, %v348_v19, 0  ;;  %v349_v24 = vpack.c.bf16 %v105_v21, %v105_v21  ;;  %v365_v25 = vpop.f32.mrb[3].mxu0 }
 0x15a   :  { %v121_v26 = vshrl.u32 %v118_v23, 16  ;;  %v123_v27 = vshll.u32 %v118_v23, 16  ;;  %v139_v28 = vrot.slane %v118_v23, 1 }
 0x15b   :  { %v120_v29 = vsel %vm115_vm4, %v349_v24, 0 }
 0x15c   :  { %v129_v30 = vshll.u32 %v120_v29, 16  ;;  %141 = vrot.lane.b32.xlu0 %v139_v28, %s396_s25  ;;  %v140_v31 = vrot.slane %v120_v29, 1  ;;  %v145_v32 = vrot.slane %v121_v26, 1  ;;  %v146_v33 = vrot.slane %v123_v27, 2  ;;  %v345_v28 = vld [vmem:[%s478_s3 + $0x2] ss:$0 sm:$0xff] }
 0x15d   :  { %v125_v35 = vrot.slane %v123_v27, 1  ;;  %v127_v38 = vshrl.u32 %v120_v29, 16 }
 0x15e   :  { %143 = vrot.lane.b32.xlu1 %v140_v31, %s396_s25  ;;  %v147_v36 = vor.u32 %v146_v33, %v145_v32  ;;  %v131_v39 = vrot.slane %v129_v30, 1  ;;  %v149_v42 = vrot.slane %v129_v30, 2 }
 0x15f   :  { %v126_v37 = vor.u32 %v125_v35, %v121_v26  ;;  %v148_v41 = vrot.slane %v127_v38, 1 }
 0x160   :  { %151 = vrot.lane.b32.xlu0 %v147_v36, %s397_s28  ;;  %v132_v40 = vor.u32 %v131_v39, %v127_v38 }
 0x161   :  { %v150_v43 = vor.u32 %v149_v42, %v148_v41 }
 0x162   :  { %133 = vrot.lane.b32.xlu1 %v126_v37, %s398_s29 }
 0x166   :  { %135 = vrot.lane.b32.xlu1 %v132_v40, %s398_s29 }
 0x16a   :  { %153 = vrot.lane.b32.xlu1 %v150_v43, %s397_s28 }
 0x1ce   :  { %v142_v46 = vpop.permute.xlu0 %141 }
 0x1d0   :  { %v144_v44 = vpop.permute.xlu1 %143 }
 0x1d2   :  { %v152_v51 = vpop.permute.xlu0 %151 }
 0x1d4   :  { %v134_v45 = vpop.permute.xlu1 %133 }
 0x1d5   :  { %v157_v47 = vsel %vm155_vm5, %v118_v23, %v134_v45 }
 0x1d6   :  { %v161_v50 = vsel %vm64_vm3, %v157_v47, %v142_v46 }
 0x1d7   :  { %v166_v54 = vsel %vm164_vm6, %v161_v50, %v152_v51 }
 0x1d8   :  { %v136_v48 = vpop.permute.xlu1 %135 }
 0x1d9   :  { %v159_v49 = vsel %vm155_vm5, %v120_v29, %v136_v48 }
 0x1da   :  { %v163_v52 = vsel %vm64_vm3, %v159_v49, %v144_v44  ;;  %vm323_vm3 = vcmask 1024  }
 0x1dc   :  { %v154_v53 = vpop.permute.xlu1 %153 }
 0x1dd   :  { %v168_v55 = vsel %vm164_vm6, %v163_v52, %v154_v53 }
 0x1de   :  { %v337_v56 = vcombine.low %v166_v54, %v168_v55 }
 0x1e0   :  { %375 = vmatmul.mubr.msk.bf16.vlgmr.msra.gmra.mrb[0].mxu1 %vm206_vm7, %v337_v56 }
 0x2b3   :  { %v244_v62 = vpop.f32.mrb[0].mxu1 }
 0x2b4   :  { %v256_v63 = vadd.f32 %v343_v60, %v244_v62  ;;  %v376_v0 = vpop.f32.mrb[1].mxu1 }
 0x2b5   :  { %v247_v1 = vpop.f32.mrb[2].mxu1 }
 0x2b6   :  { %v258_v3 = vmax.f32 %v256_v63, 0.0  ;;  %v257_v4 = vadd.f32 %v343_v60, %v247_v1  ;;  %v377_v5 = vpop.f32.mrb[3].mxu1 }
 0x2b8   :  { %v277_v6 = vsel %vm274_vm15, %v258_v3, 0.0  ;;  %v259_v7 = vmax.f32 %v257_v4, 0.0 }
 0x2b9   :  { %v280_v8 = vsel %vm279_vm0, %v277_v6, -inf }
 0x2ba   :  { %v281_v9 = vrot.slane %v280_v8, 4  ;;  %v278_v10 = vsel %vm274_vm15, %v259_v7, 0.0 }
 0x2bb   :  { %v287_v11 = vsel %vm279_vm0, %v278_v10, -inf }
 0x2bc   :  { %v282_v12 = vmax.f32 %v280_v8, %v281_v9  ;;  %v288_v13 = vrot.slane %v287_v11, 4 }
 0x2be   :  { %v283_v14 = vrot.slane %v282_v12, 2  ;;  %v289_v15 = vmax.f32 %v287_v11, %v288_v13 }
 0x2c0   :  { %v284_v16 = vmax.f32 %v282_v12, %v283_v14  ;;  %v290_v17 = vrot.slane %v289_v15, 2 }
 0x2c2   :  { %v285_v18 = vrot.slane %v284_v16, 1  ;;  %v291_v19 = vmax.f32 %v289_v15, %v290_v17 }
 0x2c4   :  { %v292_v2 = vrot.slane %v291_v19, 1  ;;  %v286_v20 = vmax.f32 %v284_v16, %v285_v18 }
 0x2c6   :  { %v293_v21 = vmax.f32 %v291_v19, %v292_v2  ;;  %v299_v24 = vmul.f32 %v344_v22, %v286_v20 }
 0x2c8   :  { %v300_v23 = vmul.f32 %v344_v22, %v293_v21 }
 0x2ca   :  { %v303_v25 = vrot.slane %v300_v23, 7 }
 0x2cc   :  { %v305_v26 = vsel %vm304_vm1, %v303_v25, %v299_v24 }
 0x2cd   :  { %v308_v27 = vsel %vm307_vm2, %v305_v26, 0.0 }
 0x2ce   :  { %309 = vadd.xlane.f32.xlu0 %v308_v27 }
 0x35b   :  { %v310_v29 = vpop.xlane.xlu0 %309 }
 0x35c   :  { %v316_v30 = vadd.f32 %v345_v28, %v310_v29 }
 0x35e   :  { %v346_v31 = vmul.f32 -1.442695, %v316_v30 }
 0x360   :  { %390 = vpow2.f32 %v346_v31 }
 0x36a   :  { %v391_v32 = vpop.eup %390 }
 0x36b   :  { %v320_v33 = vadd.f32 1.0, %v391_v32 }
 0x36d   :  { %392 = vrcp.f32 %v320_v33 }
 0x377   :  { %v393_v34 = vpop.eup %392 }
 0x378   :  { %324 = vst.msk [vmem:[%s479_s4] sm:$0x3] %vm323_vm3, %v393_v34 }

</bundles_post_ra>
